<compile_context>
chip_gen: v7x
topology: tpu7x:2x2x1
jax: 0.10.0
libtpu: 0.0.40
codegen_flags: <defaults>
</compile_context>

<pallas_src>
import functools
import math

import jax
import jax.numpy as jnp
from jax.experimental import pallas as pl
from jax.experimental.pallas import tpu as pltpu


def _round_up(x, m):
    return (x + m - 1) // m * m


def _cdiv(a, b):
    return (a + b - 1) // b


# ----------------------------------------------------------------------------
# Kernel: grid = (row_tiles, hidden_tiles).  Hidden axis is the reduction
# ("arbitrary", last); an f32 accumulator scratch carries the partial fc2
# result across hidden tiles for the current row tile.
# ----------------------------------------------------------------------------
def _ffn_kernel(x_ref, w1_ref, b1_ref, w2_ref, b2_ref, o_ref, acc_ref, *, mxu_dtype):
    j = pl.program_id(1)

    @pl.when(j == 0)
    def _init():
        acc_ref[...] = jnp.zeros_like(acc_ref)

    x = x_ref[...]
    if x.dtype != mxu_dtype:
        x = x.astype(mxu_dtype)  # per-tile cast only; weights arrive pre-cast

    # fc1 partial (this hidden tile): f32 accumulation, f32 bias-add + ReLU.
    h = jnp.dot(x, w1_ref[...], preferred_element_type=jnp.float32)
    h = jnp.maximum(h + b1_ref[...], 0.0)

    # fc2 partial-sum into the f32 accumulator (MXU operands in mxu_dtype).
    acc_ref[...] += jnp.dot(h.astype(mxu_dtype), w2_ref[...],
                            preferred_element_type=jnp.float32)

    @pl.when(j == pl.num_programs(1) - 1)
    def _finalize():
        o_ref[...] = (acc_ref[...] + b2_ref[...]).astype(o_ref.dtype)


# ----------------------------------------------------------------------------
# Tiling / VMEM helpers
# ----------------------------------------------------------------------------
def _choose_hidden_tile(d_hidden, target):
    """Largest hidden tile <= target that is a multiple of 128 AND divides
    d_hidden exactly (a ragged hidden block would contaminate the reduction).
    Falls back to the full hidden width."""
    if d_hidden <= target or d_hidden % 128 != 0:
        return d_hidden
    cand = (min(target, d_hidden) // 128) * 128
    while cand >= 128:
        if d_hidden % cand == 0:
            return cand
        cand -= 128
    return d_hidden


def _vmem_capacity_bytes():
    try:
        cap = getattr(pltpu.get_tpu_info(), "vmem_capacity_bytes", None)
        if cap:
            return int(cap)
    except Exception:
        pass
    return 64 << 20  # conservative default: v7x per-TensorCore VMEM


def _vmem_estimate(bm, tk_h, d_model, w_bytes, x_bytes):
    f32 = 4
    x_tiles = 2 * bm * d_model * x_bytes                       # x, double-buffered
    out_tiles = 2 * bm * d_model * x_bytes                     # out, double-buffered
    w_tiles = 2 * (d_model * tk_h + tk_h * d_model) * w_bytes  # streamed W1/W2 tiles
    b_tiles = 2 * (tk_h + d_model) * f32                       # b1 tile + resident b2
    acc = bm * d_model * f32                                   # accumulator scratch
    inter = bm * tk_h * (f32 + 2) + bm * d_model * 2           # h (f32+bf16) + x cast
    return x_tiles + out_tiles + w_tiles + b_tiles + acc + inter


# ----------------------------------------------------------------------------
# Wrapper
# ----------------------------------------------------------------------------
def position_wise_feed_forward(x, params, *, block_m=512, block_h=2048):
    """x: (..., d_model).  params: pre-transposed (in, out) weights, see init.

    MXU operand dtype follows the weight dtype (bf16 by default → full MXU
    rate with f32 accumulation; pass f32 weights for an exact-f32 path).
    """
    orig_shape = x.shape
    d_model = orig_shape[-1]
    w1, b1, w2, b2 = params["w1"], params["b1"], params["w2"], params["b2"]
    d_hidden = w1.shape[1]
    assert w1.shape == (d_model, d_hidden)
    assert w2.shape == (d_hidden, d_model)

    m = int(math.prod(orig_shape[:-1])) if len(orig_shape) > 1 else 1
    x2d = x.reshape(m, d_model)

    mxu_dtype = jnp.dtype(w1.dtype)
    w_bytes = mxu_dtype.itemsize
    x_bytes = jnp.dtype(x.dtype).itemsize

    # Row-tile size: multiple of 8 (sublane); cap so grid_m >= 2 (megacore).
    bm = max(8, _round_up(min(int(block_m), _round_up(m, 8)), 8))
    if m > 8:
        bm = min(bm, _round_up(_cdiv(m, 2), 8))

    # Hidden-tile size: multiple of 128 dividing d_hidden (or full width).
    tk_h = _choose_hidden_tile(d_hidden, int(block_h))

    # VMEM budget: clamp to hardware capacity; shrink bm if over budget.
    cap = _vmem_capacity_bytes()
    budget = cap - (8 << 20)
    while _vmem_estimate(bm, tk_h, d_model, w_bytes, x_bytes) > budget and bm > 8:
        bm = max(8, _round_up(bm // 2, 8))
    est = _vmem_estimate(bm, tk_h, d_model, w_bytes, x_bytes)
    vmem_limit = int(min(cap - (4 << 20), max(int(1.4 * est) + (4 << 20), 32 << 20)))

    grid_m = _cdiv(m, bm)          # ragged last block handled by Pallas masking
    grid_h = d_hidden // tk_h

    flops = 4 * m * d_model * d_hidden
    bytes_accessed = (2 * m * d_model * x_bytes                      # x in, y out
                      + grid_m * 2 * d_model * d_hidden * w_bytes    # weights per row tile
                      + (d_hidden + d_model) * 4)                    # biases
    cost = pl.CostEstimate(flops=flops, transcendentals=0,
                           bytes_accessed=bytes_accessed)

    out = pl.pallas_call(
        functools.partial(_ffn_kernel, mxu_dtype=mxu_dtype),
        grid=(grid_m, grid_h),
        in_specs=[
            pl.BlockSpec((bm, d_model), lambda i, j: (i, 0)),      # x rows (const over j)
            pl.BlockSpec((d_model, tk_h), lambda i, j: (0, j)),    # W1 hidden tile
            pl.BlockSpec((1, tk_h), lambda i, j: (0, j)),          # b1 hidden tile
            pl.BlockSpec((tk_h, d_model), lambda i, j: (j, 0)),    # W2 hidden tile
            pl.BlockSpec((1, d_model), lambda i, j: (0, 0)),       # b2 resident
        ],
        out_specs=pl.BlockSpec((bm, d_model), lambda i, j: (i, 0)),
        out_shape=jax.ShapeDtypeStruct((m, d_model), x.dtype),
        scratch_shapes=[pltpu.VMEM((bm, d_model), jnp.float32)],
        compiler_params=pltpu.CompilerParams(
            dimension_semantics=("parallel", "arbitrary"),
            vmem_limit_bytes=vmem_limit,
        ),
        cost_estimate=cost,
    )(x2d, w1, b1.reshape(1, d_hidden), w2, b2.reshape(1, d_model))

    return out.reshape(orig_shape)


# ----------------------------------------------------------------------------
# Deterministic nn.Linear-style init (PyTorch layout), pre-transposed once and
# cast ONCE to the MXU dtype (bf16 default).  Biases stay f32.
# ----------------------------------------------------------------------------
def init_ffn_params(key, d_model, d_hidden, *, param_dtype=jnp.bfloat16):
    k1w, k1b, k2w, k2b = jax.random.split(key, 4)
    bound1 = 1.0 / math.sqrt(d_model)
    w1_torch = jax.random.uniform(k1w, (d_hidden, d_model), jnp.float32, -bound1, bound1)
    b1 = jax.random.uniform(k1b, (d_hidden,), jnp.float32, -bound1, bound1)
    bound2 = 1.0 / math.sqrt(d_hidden)
    w2_torch = jax.random.uniform(k2w, (d_model, d_hidden), jnp.float32, -bound2, bound2)
    b2 = jax.random.uniform(k2b, (d_model,), jnp.float32, -bound2, bound2)
    return {"w1": w1_torch.T.astype(param_dtype), "b1": b1,
            "w2": w2_torch.T.astype(param_dtype), "b2": b2}


def _reference(x, params):
    w1f = params["w1"].astype(jnp.float32)
    w2f = params["w2"].astype(jnp.float32)
    x2d = x.reshape(-1, x.shape[-1])
    ref = jnp.maximum(x2d @ w1f + params["b1"], 0.0) @ w2f + params["b2"]
    return ref.reshape(x.shape)


# ----------------------------------------------------------------------------
if __name__ == "__main__":
    root = jax.random.PRNGKey(0)

    # Test 1: tiny shape (exercises grid_m=2, grid_h=1).
    d_model, d_hidden, batch, seq = 32, 64, 2, 8
    k_x, k_p, root = jax.random.split(root, 3)
    x = jax.random.normal(k_x, (batch, seq, d_model), jnp.float32)
    params = init_ffn_params(k_p, d_model, d_hidden)
    out = position_wise_feed_forward(x, params)
    jax.block_until_ready(out)
    ref = _reference(x, params)
    assert out.shape == ref.shape
    assert bool(jnp.all(jnp.isfinite(out)))
    # bf16 MXU operands (f32 accumulation) -> looser tolerance than pure f32.
    assert bool(jnp.allclose(out, ref, rtol=2e-2, atol=2e-2)), "mismatch (test 1)"

    # Test 2: exercises the hidden-reduction grid axis and a ragged row tile.
    d_model, d_hidden, batch, seq = 128, 512, 2, 7
    k_x, k_p, root = jax.random.split(root, 3)
    x = jax.random.normal(k_x, (batch, seq, d_model), jnp.float32)
    params = init_ffn_params(k_p, d_model, d_hidden)
    out = position_wise_feed_forward(x, params, block_h=128)  # grid_h = 4
    jax.block_until_ready(out)
    ref = _reference(x, params)
    assert out.shape == ref.shape
    assert bool(jnp.all(jnp.isfinite(out)))
    assert bool(jnp.allclose(out, ref, rtol=2e-2, atol=2e-2)), "mismatch (test 2)"

    print("KERNEL_OK")
</pallas_src>

<mosaic_0001>
module attributes {stable_mosaic.version = 11 : i64} {
  func.func @_ffn_kernel(%arg0: i32, %arg1: i32, %arg2: memref<8x32xf32, #tpu.memory_space<vmem>>, %arg3: memref<32x64xbf16, #tpu.memory_space<vmem>>, %arg4: memref<1x64xf32, #tpu.memory_space<vmem>>, %arg5: memref<64x32xbf16, #tpu.memory_space<vmem>>, %arg6: memref<1x32xf32, #tpu.memory_space<vmem>>, %arg7: memref<8x32xf32, #tpu.memory_space<vmem>>, %arg8: memref<8x32xf32, #tpu.memory_space<vmem>>) attributes {dimension_semantics = [#tpu.dimension_semantics<parallel>, #tpu.dimension_semantics<arbitrary>], iteration_bounds = array<i64: 2, 1>, scalar_prefetch = 0 : i64, scratch_operands = 1 : i64, tpu.core_type = #tpu.core_type<tc>, window_params = [{transform_indices = @transform_0, window_bounds = array<i64: 8, 32>}, {transform_indices = @transform_1, window_bounds = array<i64: 32, 64>}, {transform_indices = @transform_2, window_bounds = array<i64: 1, 64>}, {transform_indices = @transform_3, window_bounds = array<i64: 64, 32>}, {pipeline_mode = #tpu.pipeline_mode<synchronous>, transform_indices = @transform_4, window_bounds = array<i64: 1, 32>}, {transform_indices = @transform_5, window_bounds = array<i64: 8, 32>}]} {
    %c0_i32 = arith.constant 0 : i32
    %0 = arith.cmpi eq, %arg1, %c0_i32 : i32
    %1 = arith.extui %0 : i1 to i32
    %c0_i32_0 = arith.constant 0 : i32
    %2 = arith.cmpi ne, %1, %c0_i32_0 : i32
    scf.if %2 {
      %cst_16 = arith.constant 0.000000e+00 : f32
      %21 = vector.broadcast %cst_16 : f32 to vector<8x32xf32>
      %c0_17 = arith.constant 0 : index
      %c0_18 = arith.constant 0 : index
      %22 = vector.load %arg8[%c0_17, %c0_18] : memref<8x32xf32, #tpu.memory_space<vmem>>, vector<8x32xf32>
      tpu.vector_store %arg8[%c0_17, %c0_18], %21 {strides = array<i32>} : memref<8x32xf32, #tpu.memory_space<vmem>>, vector<8x32xf32>,
    } else {
    }
    %c0 = arith.constant 0 : index
    %c0_1 = arith.constant 0 : index
    %3 = vector.load %arg2[%c0, %c0_1] : memref<8x32xf32, #tpu.memory_space<vmem>>, vector<8x32xf32>
    %4 = arith.truncf %3 : vector<8x32xf32> to vector<8x32xbf16>
    %c0_2 = arith.constant 0 : index
    %c0_3 = arith.constant 0 : index
    %5 = vector.load %arg3[%c0_2, %c0_3] : memref<32x64xbf16, #tpu.memory_space<vmem>>, vector<32x64xbf16>
    %cst = arith.constant dense<0.000000e+00> : vector<8x64xf32>
    %6 = tpu.matmul %4, %5, %cst {dimension_numbers = #tpu.dot_dimension_numbers<[1], [0], [0], [1], [0, 0, 1, 1], [], []>} : vector<8x32xbf16>, vector<32x64xbf16>, vector<8x64xf32> -> vector<8x64xf32>
    %c0_4 = arith.constant 0 : index
    %c0_5 = arith.constant 0 : index
    %7 = vector.load %arg4[%c0_4, %c0_5] : memref<1x64xf32, #tpu.memory_space<vmem>>, vector<1x64xf32>
    %8 = vector.broadcast %7 : vector<1x64xf32> to vector<8x64xf32>
    %9 = arith.addf %6, %8 : vector<8x64xf32>
    %cst_6 = arith.constant 0.000000e+00 : f32
    %10 = vector.broadcast %cst_6 : f32 to vector<8x64xf32>
    %11 = arith.maximumf %9, %10 : vector<8x64xf32>
    %c0_7 = arith.constant 0 : index
    %c0_8 = arith.constant 0 : index
    %12 = vector.load %arg8[%c0_7, %c0_8] : memref<8x32xf32, #tpu.memory_space<vmem>>, vector<8x32xf32>
    %13 = arith.truncf %11 : vector<8x64xf32> to vector<8x64xbf16>
    %c0_9 = arith.constant 0 : index
    %c0_10 = arith.constant 0 : index
    %14 = vector.load %arg5[%c0_9, %c0_10] : memref<64x32xbf16, #tpu.memory_space<vmem>>, vector<64x32xbf16>
    %cst_11 = arith.constant dense<0.000000e+00> : vector<8x32xf32>
    %15 = tpu.matmul %13, %14, %cst_11 {dimension_numbers = #tpu.dot_dimension_numbers<[1], [0], [0], [1], [0, 0, 1, 1], [], []>} : vector<8x64xbf16>, vector<64x32xbf16>, vector<8x32xf32> -> vector<8x32xf32>
    %16 = arith.addf %12, %15 : vector<8x32xf32>
    %c0_12 = arith.constant 0 : index
    %c0_13 = arith.constant 0 : index
    %17 = vector.load %arg8[%c0_12, %c0_13] : memref<8x32xf32, #tpu.memory_space<vmem>>, vector<8x32xf32>
    tpu.vector_store %arg8[%c0_12, %c0_13], %16 {strides = array<i32>} : memref<8x32xf32, #tpu.memory_space<vmem>>, vector<8x32xf32>,
    %c0_i32_14 = arith.constant 0 : i32
    %18 = arith.cmpi eq, %arg1, %c0_i32_14 : i32
    %19 = arith.extui %18 : i1 to i32
    %c0_i32_15 = arith.constant 0 : i32
    %20 = arith.cmpi ne, %19, %c0_i32_15 : i32
    scf.if %20 {
      %c0_16 = arith.constant 0 : index
      %c0_17 = arith.constant 0 : index
      %21 = vector.load %arg8[%c0_16, %c0_17] : memref<8x32xf32, #tpu.memory_space<vmem>>, vector<8x32xf32>
      %c0_18 = arith.constant 0 : index
      %c0_19 = arith.constant 0 : index
      %22 = vector.load %arg6[%c0_18, %c0_19] : memref<1x32xf32, #tpu.memory_space<vmem>>, vector<1x32xf32>
      %23 = vector.broadcast %22 : vector<1x32xf32> to vector<8x32xf32>
      %24 = arith.addf %21, %23 : vector<8x32xf32>
      %c0_20 = arith.constant 0 : index
      %c0_21 = arith.constant 0 : index
      %25 = vector.load %arg7[%c0_20, %c0_21] : memref<8x32xf32, #tpu.memory_space<vmem>>, vector<8x32xf32>
      tpu.vector_store %arg7[%c0_20, %c0_21], %24 {strides = array<i32>} : memref<8x32xf32, #tpu.memory_space<vmem>>, vector<8x32xf32>,
    } else {
    }
    return
  }
  func.func @transform_0(%arg0: i32, %arg1: i32) -> (i32, i32) {
    %c0_i32 = arith.constant 0 : i32
    %c0_i32_0 = arith.constant 0 : i32
    return %arg0, %c0_i32 : i32, i32
  }
  func.func @transform_1(%arg0: i32, %arg1: i32) -> (i32, i32) {
    %c0_i32 = arith.constant 0 : i32
    %c0_i32_0 = arith.constant 0 : i32
    return %c0_i32, %arg1 : i32, i32
  }
  func.func @transform_2(%arg0: i32, %arg1: i32) -> (i32, i32) {
    %c0_i32 = arith.constant 0 : i32
    %c0_i32_0 = arith.constant 0 : i32
    return %c0_i32, %arg1 : i32, i32
  }
  func.func @transform_3(%arg0: i32, %arg1: i32) -> (i32, i32) {
    %c0_i32 = arith.constant 0 : i32
    %c0_i32_0 = arith.constant 0 : i32
    return %arg1, %c0_i32 : i32, i32
  }
  func.func @transform_4(%arg0: i32, %arg1: i32) -> (i32, i32) {
    %c0_i32 = arith.constant 0 : i32
    %c0_i32_0 = arith.constant 0 : i32
    %c0_i32_1 = arith.constant 0 : i32
    return %c0_i32, %c0_i32_0 : i32, i32
  }
  func.func @transform_5(%arg0: i32, %arg1: i32) -> (i32, i32) {
    %c0_i32 = arith.constant 0 : i32
    %c0_i32_0 = arith.constant 0 : i32
    return %arg0, %c0_i32 : i32, i32
  }
}

</mosaic_0001>

<bundles_post_ra>
// kernel: tpu_custom_call.1
= control target key start
LH: loop header
LB: loop body
LE: loop exit
PB: predicated region body
PF: predicated region fallthrough
CT: control target
= control target key end

     0   :  { %10 = vsyncpa [#allocation4], 0  ;;  %s946_s0 = inlined_call_operand.vmem [shape: f32[16,32], index: 0, kind: input, shape index: {}]   ;;  %s947_s1 = inlined_call_operand.vmem [shape: bf16[32,64], index: 1, kind: input, shape index: {}]   ;;  %s948_s2 = inlined_call_operand.vmem [shape: f32[1,64], index: 2, kind: input, shape index: {}]   ;;  %s949_s3 = inlined_call_operand.vmem [shape: bf16[64,32], index: 3, kind: input, shape index: {}]   ;;  %s950_s4 = inlined_call_operand.vmem [shape: f32[1,32], index: 4, kind: input, shape index: {}]   ;;  %s951_s5 = inlined_call_operand.hbm [shape: f32[16,32], index: 5, kind: output, shape index: {}]  }
   0x1   :  { %12 = vsyncpa [#allocation4 + $0x1], 0  ;;  %s806_s18 = smov 0   ;;  %s808_s19 = smov 0  }
   0x2   :  { %s810_s20 = smov 0   ;;  %s812_s21 = smov 0  }
   0x3   :  { %s814_s22 = smov 0   ;;  %s816_s23 = smov 0  }
   0x4 LB: > { %s578_s24 = sadd.s32 4294967295, %s771_s23   ;;  %s579_s25 = sadd.s32 4294967294, %s771_s23   ;;  %s771_s23 = sphi %s816_s23, %s18_s23   ;;  %s767_s22 = sphi %s814_s22, %s958_s22   ;;  %s763_s21 = sphi %s812_s21, %s957_s21   ;;  %s759_s20 = sphi %s810_s20, %s956_s20   ;;  %s755_s19 = sphi %s808_s19, %s955_s19   ;;  %s751_s18 = sphi %s806_s18, %s954_s18  }
   0x5   : > { %s30_s26 = sadd.s32 1, %s767_s22  ;;  %s162_s27 = sadd.s32 1, %s759_s20 }
   0x6   : > { %p32_p0 = scmp.ge.s32.totalorder %s30_s26, 2  ;;  %p172_p1 = scmp.ne.s32.totalorder %s759_s20, %s755_s19 }
   0x7   : > { %p173_p2 = scmp.eq.s32.totalorder %s578_s24, 1  ;;  %p178_p3 = scmp.ne.s32.totalorder %s755_s19, %s751_s18 }
   0x8   : > { %s960_s26 = smov (%p32_p0, %s30_s26), 0  ;;  %p179_p5 = scmp.eq.s32.totalorder %s579_s25, 1 }
   0x9   : > { %p846_p4 = por %p173_p2, %p172_p1  ;;  %s159_s29 = ssub.s32 %s767_s22, %s960_s26 }
   0xa   : > { %p585_p6 = scmp.ge.s32.totalorder %s771_s23, 1  ;;  %p160_p7 = scmp.eq.s32.totalorder %s159_s29, 0 }
   0xb   : > { %p853_p8 = por %p179_p5, %p178_p3  ;;  %p229_p9 = scmp.lt.s32.totalorder %s771_s23, 3 }
   0xc   : > { %s859_s6 = scalar_select %p160_p7, %s759_s20, %s162_s27  }
   0xd   : > { %p230_p10 = pnand %p585_p6, %p229_p9 }
   0xe   : > { %v687_v0 = vld [vmem:[%s947_s1] sm:$0xff] (!%p230_p10)   ;;  %v773_v1 = vmov (!%p230_p10), 0.0   ;;  %v688_v2 = vld [vmem:[%s947_s1 + $0x8] sm:$0xff] (!%p230_p10)   ;;  %vm774_vm0 = vmmov (!%p230_p10), 0   ;;  %p268_p11 = scmp.lt.s32.totalorder (!%p230_p10), %s763_s21, 1  ;;  %vm290_vm1 = vcmask (!%p230_p10), 261120  }
   0xf   : > { %233 = sbr.rel (%p230_p10) target bundleno = 485 (0x1e5), region = 40  ;;  %610 = vmatprep.subr.bf16.mxu0 (!%p230_p10), %v773_v1  ;;  %618 = vmatprep.subr.bf16.mxu1 (!%p230_p10), %v773_v1  ;;  %291 = vst.msk [vmem:[#allocation2] sm:$0xff] (!%p230_p10), %vm290_vm1, %v773_v1  ;;  %v689_v3 = vld [vmem:[%s949_s3] sm:$0xff] (!%p230_p10)   ;;  %v690_v4 = vld [vmem:[%s949_s3 + $0x8] sm:$0xff] (!%p230_p10)   ;;  %v691_v7 = vld [vmem:[%s949_s3 + $0x10] sm:$0xff] (!%p230_p10)   ;;  %vm396_vm2 = vcmask (!%p230_p10), 523264  }
  0x10   : > { %611 = vmatpush3.bf16.msra.mxu0 (!%p230_p10), %v687_v0  ;;  %614 = vmatprep.mubr.msk.bf16.mxu0 (!%p230_p10), %vm774_vm0, %v773_v1  ;;  %v692_v8 = vld [vmem:[%s949_s3 + $0x18] sm:$0xff] (!%p230_p10)   ;;  %v588_v9 = vld [vmem:[%s948_s2] ss:$0 sm:$0xff] (!%p230_p10)  ;;  %s265_s11 = sand.u32 (!%p230_p10), 1, %s755_s19   ;;  %s599_s15 = sshll.u32 (!%p230_p10), %s763_s21, 7 }
  0x11   : > { %612 = vmatprep.subr.bf16.mxu0 (!%p230_p10), %v773_v1  ;;  %626 = vmatprep.mubr.msk.bf16.mxu1 (!%p230_p10), %vm774_vm0, %v773_v1  ;;  %s586_s12 = sshll.u32 (!%p230_p10), %s265_s11, 3  ;;  %v597_v23 = vld [vmem:[%s950_s4] ss:$0 sm:$0xff] (!%p230_p10)  ;;  %s898_s27 = scalar_lea.hbm (!%p230_p10), %s951_s5, %s599_s15 }
  0x12   : > { %619 = vmatpush3.bf16.msra.mxu1 (!%p230_p10), %v689_v3  ;;  %s456_s29 = scalar_lea.sflag (!%p230_p10), [#allocation4], %s265_s11 }
  0x13   : > { %620 = vmatprep.subr.bf16.mxu1 (!%p230_p10), %v773_v1 }
  0x14   : > { %613 = vmatpush3.bf16.msra.mxu0 (!%p230_p10), %v688_v2 }
  0x16   : > { %s269_s13 = scalar_select %p268_p11, %s763_s21, 1  ;;  %621 = vmatpush3.bf16.msra.mxu1 %v690_v4  ;;  %v362_v17 = vld [vmem:[#allocation2] sm:$0xff] }
  0x17   : > { %622 = vmatprep.subr.bf16.mxu1 %v773_v1  ;;  %s775_s21 = smov [#allocation3]  }
  0x18   : > { %s587_s16 = sshll.u32 %s269_s13, 3  ;;  %s697_s8 = sshll.u32 %s775_s21, 4  ;;  %s698_s8 = int_to_ptr.vmem [resolvable:$false] %s697_s8 }
  0x19   : > { %s271_s25 = scalar_lea.vmem %s946_s0, %s587_s16  ;;  %s267_s16 = scalar_lea.vmem [#allocation3], %s586_s12 }
  0x1a   : > { %v292_v5 = vld [vmem:[%s271_s25] sm:$0xff]  ;;  %623 = vmatpush3.bf16.msra.mxu1 %v691_v7  ;;  %s469_s17 = sshll.u32 %s267_s16, 4  ;;  %s699_s9 = scalar_lea.vmem %s698_s8, 256  ;;  %s900_s17 = int_to_ptr.vmem [resolvable:$true] %s469_s17 }
  0x1b   : > { %v293_v6 = vpack.c.bf16 %v292_v5, %v292_v5  ;;  %624 = vmatprep.subr.bf16.mxu1 %v773_v1  ;;  %s693_s7 = scalar_lea.vmem %s900_s17, 128  ;;  %p700_p1 = scmp.lt.s32.totalorder %s900_s17, %s698_s8 }
  0x1c   : > { %p694_p12 = scmp.ne.s32.totalorder %s900_s17, %s693_s7  ;;  %p701_p2 = scmp.lt.s32.totalorder %s699_s9, %s693_s7 }
  0x1d   : > { %615 = vmatmul.mubr.msk.bf16.vlgmr.msra.gmra.mrb[0].mxu0 %vm290_vm1, %v293_v6 }
  0x1e   : > { %625 = vmatpush3.bf16.msra.mxu1 %v692_v8  ;;  %p695_p13 = pnand %p694_p12, %p846_p4  ;;  %p702_p3 = por %p701_p2, %p700_p1 }
  0x20   : > { %p696_p0 = pneg %p695_p13 }
  0x22   : > { %p703_p5 = pnand %p702_p3, %p696_p0 }
  0xf0   : > { %v355_v10 = vpop.f32.mrb[0].mxu0 }
  0xf1   : > { %v356_v11 = vadd.f32 %v588_v9, %v355_v10  ;;  %v616_v12 = vpop.f32.mrb[1].mxu0 }
  0xf2   : > { %v358_v13 = vpop.f32.mrb[2].mxu0 }
  0xf3   : > { %v361_v14 = vmax.f32 %v356_v11, 0.0  ;;  %v617_v15 = vpop.f32.mrb[3].mxu0 }
  0xf5   : > { %v363_v16 = vpack.c.bf16 %v361_v14, %v361_v14 }
  0xf7   : > { %627 = vmatmul.mubr.msk.bf16.vlgmr.msra.gmra.mrb[0].mxu1 %vm396_vm2, %v363_v16 }
 0x1ca   : > { %v434_v18 = vpop.f32.mrb[0].mxu1 }
 0x1cb   : > { %v440_v19 = vadd.f32 %v434_v18, %v362_v17  ;;  %v628_v20 = vpop.f32.mrb[1].mxu1 }
 0x1cc   : > { %v437_v21 = vpop.f32.mrb[2].mxu1 }
 0x1cd   : > { %441 = vst.msk [vmem:[#allocation2] sm:$0xff] %vm290_vm1, %v440_v19  ;;  %v629_v22 = vpop.f32.mrb[3].mxu1 }
 0x1d4   : > { %v445_v24 = vld [vmem:[#allocation2] sm:$0xff] }
 0x1d5   : > { %v453_v25 = vadd.f32 %v597_v23, %v445_v24 }
 0x1d7   : > { %454 = vst.msk [vmem:[%s267_s16] sm:$0xff] %vm290_vm1, %v453_v25 }
 0x1d8   : > { %706 = shalt.err (!%p703_p5)
}
 0x1d9   : > { %s707_s10 = scalar_lea.hbm %s898_s27, 128  ;;  %s711_s13 = scalar_lea.hbm %s951_s5, 256 }
 0x1da   : > { %p708_p6 = scmp.ne.s32.totalorder %s898_s27, %s707_s10  ;;  %p712_p10 = scmp.lt.u32.totalorder %s898_s27, %s951_s5 }
 0x1db   : > { %p713_p11 = scmp.lt.u32.totalorder %s711_s13, %s707_s10  ;;  %p715_p13 = scmp.lt.u32.totalorder %s707_s10, %s898_s27 }
 0x1dc   : > { %p709_p7 = pnand %p708_p6, %p846_p4 }
 0x1dd   : > { %p714_p12 = por %p713_p11, %p712_p10 }
 0x1de   : > { %p710_p9 = pneg %p709_p7 }
 0x1df   : > { %p716_p0 = por %p715_p13, %p714_p12 }
 0x1e1   : > { %p717_p1 = pnand %p716_p0, %p710_p9 }
 0x1e3   : > { %720 = shalt.err (!%p717_p1)
}
 0x1e4   : > { %630 = dma.vmem_to_hbm [thread:$0]  (%p846_p4), %s900_s17, 128, %s898_s27, %s456_s29  }
 0x1e5 PF: > { %p636_p2 = scmp.ge.s32.totalorder %s771_s23, 2  ;;  %s481_s16 = sand.u32 1, %s751_s18  }
 0x1e6   : > { %s482_s24 = scalar_lea.sflag [#allocation4], %s481_s16 }
 0x1e7   : > { %p633_p3 = pnand %p636_p2, %p853_p8 }
 0x1e9   : > { %746 = dma.done.wait (!%p633_p3), %s482_s24, 128  }
 0x1ea   : > { %748 = vsyncadd (!%p633_p3), %s482_s24, 4294967168  ;;  %s18_s23 = sadd.s32 1, %s771_s23   ;;  %s954_s18 = smov %s755_s19 }
 0x1eb   : > { %p15_p5 = scmp.ge.s32.totalorder %s18_s23, 4   ;;  %s955_s19 = smov %s759_s20 }
 0x1ec   : > { %s956_s20 = smov %s859_s6  ;;  %s957_s21 = smov %s767_s22 }
 0x1ed   : > { %s958_s22 = smov %s960_s26  ;;  %17 = sbr.rel (!%p15_p5) target bundleno = 4 (0x4), region = 92 }
 0x1f4   :  { %487 = vsyncpa [#allocation4], 1 }
 0x1f5   :  { %489 = vsyncpa [#allocation4 + $0x1], 1 }

</bundles_post_ra>
